<compile_context>
chip_gen: v7x
topology: tpu7x:2x2x1
jax: 0.10.0
libtpu: 0.0.40
codegen_flags: <defaults>
</compile_context>

<pallas_src>
import functools

import jax
import jax.numpy as jnp
from jax.experimental import pallas as pl
from jax.experimental.pallas import tpu as pltpu

EMBED_DIM = 512


def _round_up(x, m):
    return (x + m - 1) // m * m


def _default_vmem_limit_bytes():
    """Per-generation VMEM budget for this kernel (leave headroom below physical)."""
    try:
        kind = jax.devices()[0].device_kind.lower()
    except Exception:
        kind = ""
    if "v7" in kind or "7x" in kind:
        return 48 * 1024 * 1024           # v7x: 64 MiB physical per TensorCore
    if "v5" in kind or "v6" in kind:
        return 100 * 1024 * 1024          # v5e / v6e: 128 MiB physical
    return 48 * 1024 * 1024               # unknown chip: stay conservative


def prepare_weight(w_t, compute_dtype=jnp.bfloat16):
    """One-time weight prep: cast [vocab, 512] to the compute dtype and pad vocab (K) up to a
    multiple of 128.  Do this once at init, NOT per forward call, so the full f32 weight is
    not re-read/re-written to HBM on every step."""
    K, N = w_t.shape
    assert N == EMBED_DIM
    Kp = _round_up(K, 128)
    w = w_t.astype(compute_dtype)
    if Kp != K:
        w = jnp.pad(w, ((0, Kp - K), (0, 0)))
    return w


# ---------------------------------------------------------------------------
# Kernels
# ---------------------------------------------------------------------------
def _embed_kernel_resident(x_ref, w_ref, o_ref, *, l2_norm: bool):
    """num_k == 1: whole (padded) K in one block, weight VMEM-resident across the M grid."""
    acc = jnp.dot(x_ref[...], w_ref[...], preferred_element_type=jnp.float32)
    if l2_norm:
        # F.normalize(dim=-1): clamp ||row|| at 1e-12 (squared norm at 1e-24).
        sq = jnp.sum(acc * acc, axis=-1, keepdims=True)
        acc = acc * jax.lax.rsqrt(jnp.maximum(sq, 1e-24))
    o_ref[...] = acc.astype(o_ref.dtype)


def _embed_kernel_ktiled(x_ref, w_ref, o_ref, acc_ref, *, l2_norm: bool):
    """num_k > 1: K reduction across grid axis 1, f32 accumulator resident in VMEM scratch."""
    k = pl.program_id(1)

    @pl.when(k == 0)
    def _():
        acc_ref[...] = jnp.zeros_like(acc_ref)

    acc_ref[...] += jnp.dot(x_ref[...], w_ref[...], preferred_element_type=jnp.float32)

    @pl.when(k == pl.num_programs(1) - 1)
    def _():
        acc = acc_ref[...]
        if l2_norm:
            sq = jnp.sum(acc * acc, axis=-1, keepdims=True)
            acc = acc * jax.lax.rsqrt(jnp.maximum(sq, 1e-24))
        o_ref[...] = acc.astype(o_ref.dtype)


# ---------------------------------------------------------------------------
# Forward
# ---------------------------------------------------------------------------
def text_embedder_forward(x, w_prepared, *, l2_norm=False, tm=None, tk=None,
                          vmem_limit_bytes=None):
    """x: [B, vocab_dim] (any float dtype); w_prepared: output of prepare_weight()
    ([Kp, 512], Kp = vocab rounded up to 128, compute dtype).  Returns [B, 512] in x.dtype."""
    M, K = x.shape
    Kp, N = w_prepared.shape
    assert N == EMBED_DIM
    assert Kp % 128 == 0 and K <= Kp and Kp - K < 128, "pass prepare_weight(w_t)"
    compute_dtype = w_prepared.dtype
    out_dtype = x.dtype
    in_bytes = jnp.dtype(compute_dtype).itemsize
    out_bytes = jnp.dtype(out_dtype).itemsize

    if vmem_limit_bytes is None:
        vmem_limit_bytes = _default_vmem_limit_bytes()
    budget = vmem_limit_bytes - (2 << 20)   # headroom for compiler-internal scratch

    # ---- tm: minimize weight re-streams, keep >= 2 M tiles when M is large (v7x megacore) --
    if tm is None:
        if M >= 1024:
            tm = 512
        elif M >= 128:
            tm = 256                        # fills the 256-row MXU on v6e/v7x
        else:
            tm = _round_up(max(M, 1), 16)   # tiny batch: one padded tile (bf16 sublane pack)

    def _footprint(tm_, tk_, num_k_):
        w_b = 2 * tk_ * N * in_bytes                 # double-buffered weight tile
        x_b = 2 * tm_ * tk_ * in_bytes               # double-buffered activation tile
        o_b = 2 * tm_ * N * out_bytes                # double-buffered output tile
        acc_b = 0 if num_k_ == 1 else tm_ * N * 4    # f32 accumulator (tiled path only)
        return w_b + x_b + o_b + acc_b

    # ---- tk: prefer a VMEM-resident weight (num_k == 1, weight streamed from HBM once) ----
    if tk is None:
        if _footprint(tm, Kp, 1) <= budget:
            tk = Kp
        elif tm > 256 and _footprint(256, Kp, 1) <= budget:
            tm, tk = 256, Kp                # resident weight beats a bigger M tile
        else:
            nb = Kp // 128                  # tiled K: largest 128-multiple divisor of Kp that fits
            best = 1
            for d in range(1, nb + 1):
                if nb % d == 0 and _footprint(tm, d * 128, nb // d) <= budget:
                    best = d
            tk = best * 128
    assert tk % 128 == 0 and Kp % tk == 0, "tk must be a multiple of 128 dividing padded K"

    num_k = Kp // tk
    Mp = _round_up(M, tm)
    num_m = Mp // tm

    # ---- per-call activation cast + zero-pad (cheap; the weight was prepared once) --------
    xc = x.astype(compute_dtype)
    if (Mp, Kp) != (M, K):
        xc = jnp.pad(xc, ((0, Mp - M), (0, Kp - K)))

    weight_passes = 1 if num_k == 1 else num_m
    cost = pl.CostEstimate(
        flops=2 * Mp * Kp * N,
        transcendentals=Mp if l2_norm else 0,
        bytes_accessed=(Mp * Kp * in_bytes
                        + weight_passes * Kp * N * in_bytes
                        + Mp * N * out_bytes),
    )

    if num_k == 1:
        kernel = functools.partial(_embed_kernel_resident, l2_norm=l2_norm)
        grid_spec = pltpu.PrefetchScalarGridSpec(
            num_scalar_prefetch=0,
            grid=(num_m,),
            in_specs=[
                pl.BlockSpec((tm, Kp), lambda i: (i, 0)),    # activation tile
                pl.BlockSpec((Kp, N), lambda i: (0, 0)),     # constant block -> resident weight
            ],
            out_specs=pl.BlockSpec((tm, N), lambda i: (i, 0)),
        )
        dim_sem = ("parallel",)
    else:
        kernel = functools.partial(_embed_kernel_ktiled, l2_norm=l2_norm)
        grid_spec = pltpu.PrefetchScalarGridSpec(
            num_scalar_prefetch=0,
            grid=(num_m, num_k),
            in_specs=[
                pl.BlockSpec((tm, tk), lambda i, k: (i, k)),
                pl.BlockSpec((tk, N), lambda i, k: (k, 0)),
            ],
            out_specs=pl.BlockSpec((tm, N), lambda i, k: (i, 0)),
            scratch_shapes=[pltpu.VMEM((tm, N), jnp.float32)],
        )
        dim_sem = ("parallel", "arbitrary")

    out = pl.pallas_call(
        kernel,
        out_shape=jax.ShapeDtypeStruct((Mp, N), out_dtype),
        grid_spec=grid_spec,
        compiler_params=pltpu.CompilerParams(
            dimension_semantics=dim_sem,
            vmem_limit_bytes=vmem_limit_bytes,
        ),
        cost_estimate=cost,
    )(xc, w_prepared)

    if Mp != M:
        out = out[:M]
    return out


# ---------------------------------------------------------------------------
# Self-test
# ---------------------------------------------------------------------------
if __name__ == "__main__":
    key = jax.random.PRNGKey(0)

    def ref_matmul(x, w_t):
        # Same numerics as the kernel: bf16 inputs, f32 accumulation.
        return jnp.dot(x.astype(jnp.bfloat16), w_t.astype(jnp.bfloat16),
                       preferred_element_type=jnp.float32).astype(x.dtype)

    def ref_l2norm(y):
        sq = jnp.sum(y * y, axis=-1, keepdims=True)
        return y * jax.lax.rsqrt(jnp.maximum(sq, 1e-24))

    # ---- test 1: small Linear-compatible shapes (batch=8, vocab_dim=256) ----
    B, VOCAB = 8, 256
    kx, kw, kx2, kw2, kx3, kw3 = jax.random.split(key, 6)
    x = jax.random.normal(kx, (B, VOCAB), dtype=jnp.float32)
    bound = 1.0 / jnp.sqrt(jnp.float32(VOCAB))
    w = jax.random.uniform(kw, (EMBED_DIM, VOCAB), dtype=jnp.float32,
                           minval=-bound, maxval=bound)
    w_t = w.T                                   # [vocab_dim, 512]
    w_prep = prepare_weight(w_t)                # one-time cast + K-pad

    out = jax.block_until_ready(text_embedder_forward(x, w_prep, l2_norm=False))
    ref = ref_matmul(x, w_t)
    assert out.shape == (B, EMBED_DIM)
    assert jnp.allclose(out, ref, atol=1e-3, rtol=1e-3)
    assert jnp.allclose(out, x @ w_t, atol=3e-2, rtol=3e-2)   # vs full-f32 (bf16 rounding tol)

    out_n = jax.block_until_ready(text_embedder_forward(x, w_prep, l2_norm=True))
    assert jnp.allclose(out_n, ref_l2norm(ref), atol=1e-3, rtol=1e-3)

    # ---- test 2: non-aligned shapes exercise M/K padding on the resident path ----
    B2, VOCAB2 = 160, 300
    x2 = jax.random.normal(kx2, (B2, VOCAB2), dtype=jnp.float32)
    bound2 = 1.0 / jnp.sqrt(jnp.float32(VOCAB2))
    w2_t = jax.random.uniform(kw2, (EMBED_DIM, VOCAB2), dtype=jnp.float32,
                              minval=-bound2, maxval=bound2).T
    w2_prep = prepare_weight(w2_t)

    out2 = jax.block_until_ready(text_embedder_forward(x2, w2_prep, l2_norm=True))
    ref2 = ref_l2norm(ref_matmul(x2, w2_t))
    assert out2.shape == (B2, EMBED_DIM)
    assert jnp.allclose(out2, ref2, atol=1e-2, rtol=1e-2)

    # ---- test 3: force the K-tiled (num_k > 1) accumulator path ----
    B3, VOCAB3 = 256, 1024
    x3 = jax.random.normal(kx3, (B3, VOCAB3), dtype=jnp.float32)
    bound3 = 1.0 / jnp.sqrt(jnp.float32(VOCAB3))
    w3_t = jax.random.uniform(kw3, (EMBED_DIM, VOCAB3), dtype=jnp.float32,
                              minval=-bound3, maxval=bound3).T
    w3_prep = prepare_weight(w3_t)

    out3 = jax.block_until_ready(
        text_embedder_forward(x3, w3_prep, l2_norm=True, tk=128))   # 8 K tiles
    ref3 = ref_l2norm(ref_matmul(x3, w3_t))
    assert out3.shape == (B3, EMBED_DIM)
    assert jnp.allclose(out3, ref3, atol=1e-2, rtol=1e-2)

    print("KERNEL_OK")
</pallas_src>

<mosaic_0001>
module attributes {stable_mosaic.version = 11 : i64} {
  func.func @_embed_kernel_resident(%arg0: i32, %arg1: memref<16x256xbf16, #tpu.memory_space<vmem>>, %arg2: memref<256x512xbf16, #tpu.memory_space<vmem>>, %arg3: memref<16x512xf32, #tpu.memory_space<vmem>>) attributes {dimension_semantics = [#tpu.dimension_semantics<parallel>], iteration_bounds = array<i64: 1>, scalar_prefetch = 0 : i64, scratch_operands = 0 : i64, tpu.core_type = #tpu.core_type<tc>, window_params = [{transform_indices = @transform_0, window_bounds = array<i64: 16, 256>}, {pipeline_mode = #tpu.pipeline_mode<synchronous>, transform_indices = @transform_1, window_bounds = array<i64: 256, 512>}, {transform_indices = @transform_2, window_bounds = array<i64: 16, 512>}]} {
    %c0 = arith.constant 0 : index
    %c0_0 = arith.constant 0 : index
    %0 = vector.load %arg1[%c0, %c0_0] : memref<16x256xbf16, #tpu.memory_space<vmem>>, vector<16x256xbf16>
    %c0_1 = arith.constant 0 : index
    %c0_2 = arith.constant 0 : index
    %1 = vector.load %arg2[%c0_1, %c0_2] : memref<256x512xbf16, #tpu.memory_space<vmem>>, vector<256x512xbf16>
    %cst = arith.constant dense<0.000000e+00> : vector<16x512xf32>
    %2 = tpu.matmul %0, %1, %cst {dimension_numbers = #tpu.dot_dimension_numbers<[1], [0], [0], [1], [0, 0, 1, 1], [], []>} : vector<16x256xbf16>, vector<256x512xbf16>, vector<16x512xf32> -> vector<16x512xf32>
    %c0_3 = arith.constant 0 : index
    %c0_4 = arith.constant 0 : index
    %3 = vector.load %arg3[%c0_3, %c0_4] : memref<16x512xf32, #tpu.memory_space<vmem>>, vector<16x512xf32>
    tpu.vector_store %arg3[%c0_3, %c0_4], %2 {strides = array<i32>} : memref<16x512xf32, #tpu.memory_space<vmem>>, vector<16x512xf32>,
    return
  }
  func.func @transform_0(%arg0: i32) -> (i32, i32) {
    %c0_i32 = arith.constant 0 : i32
    %c0_i32_0 = arith.constant 0 : i32
    return %arg0, %c0_i32 : i32, i32
  }
  func.func @transform_1(%arg0: i32) -> (i32, i32) {
    %c0_i32 = arith.constant 0 : i32
    %c0_i32_0 = arith.constant 0 : i32
    %c0_i32_1 = arith.constant 0 : i32
    return %c0_i32, %c0_i32_0 : i32, i32
  }
  func.func @transform_2(%arg0: i32) -> (i32, i32) {
    %c0_i32 = arith.constant 0 : i32
    %c0_i32_0 = arith.constant 0 : i32
    return %arg0, %c0_i32 : i32, i32
  }
}

</mosaic_0001>

<bundles_post_ra>
// kernel: tpu_custom_call.1
= control target key start
LH: loop header
LB: loop body
LE: loop exit
PB: predicated region body
PF: predicated region fallthrough
CT: control target
= control target key end

     0   :  { %7 = vsyncpa [#allocation3], 0  ;;  %s854_s0 = inlined_call_operand.hbm [shape: bf16[16,256], index: 0, kind: input, shape index: {}]   ;;  %s855_s1 = inlined_call_operand.hbm [shape: bf16[256,512], index: 1, kind: input, shape index: {}]   ;;  %s856_s2 = inlined_call_operand.hbm [shape: f32[16,512], index: 2, kind: output, shape index: {}]  }
   0x1   :  { %8 = vsyncpa [#allocation6], 0 }
   0x2   :  { %9 = vsyncpa [#allocation4], 0  ;;  %s794_s9 = smov [#allocation2]   ;;  %s722_s13 = scalar_lea.hbm %s854_s0, 256 }
   0x3   :  { %s15_s10 = sshll.u32 %s794_s9, 4  ;;  %p723_p0 = scmp.ne.s32.totalorder %s854_s0, %s722_s13  ;;  %s16_s10 = int_to_ptr.vmem [resolvable:$true] %s15_s10 }
   0x4   :  { %p726_p1 = scmp.lt.u32.totalorder %s722_s13, %s854_s0 }
   0x6   :  { %p728_p2 = pnand %p726_p1, %p723_p0 }
   0x8   :  { %731 = shalt.err (!%p728_p2)
}
   0x9   :  { %s732_s18 = scalar_lea.vmem %s16_s10, 256  ;;  %p737_p4 = scmp.lt.s32.totalorder %s16_s10, %s16_s10 }
   0xa   :  { %p733_p3 = scmp.ne.s32.totalorder %s16_s10, %s732_s18  ;;  %p738_p5 = scmp.lt.s32.totalorder %s732_s18, %s732_s18 }
   0xc   :  { %p739_p6 = por %p738_p5, %p737_p4 }
   0xe   :  { %p740_p7 = pnand %p739_p6, %p733_p3 }
  0x10   :  { %743 = shalt.err (!%p740_p7)
}
  0x11   :  { %s795_s19 = smov 128   ;;  %s796_s20 = smov 8  }
  0x12   :  { %21 = dma.hbm_to_vmem [thread:$0]  %s854_s0, 256, %s16_s10, [#allocation3], %s795_s19, %s795_s19, %s796_s20  }
  0x13   :  { %s797_s23 = smov [#allocation5]   ;;  %s744_s27 = scalar_lea.hbm %s855_s1, 8192 }
  0x14   :  { %s27_s24 = sshll.u32 %s797_s23, 4  ;;  %p745_p8 = scmp.ne.s32.totalorder %s855_s1, %s744_s27  ;;  %s28_s24 = int_to_ptr.vmem [resolvable:$true] %s27_s24 }
  0x15   :  { %p748_p9 = scmp.lt.u32.totalorder %s744_s27, %s855_s1 }
  0x17   :  { %p750_p10 = pnand %p748_p9, %p745_p8 }
  0x19   :  { %753 = shalt.err (!%p750_p10)
}
  0x1a   :  { %s754_s4 = scalar_lea.vmem %s28_s24, 8192  ;;  %p759_p12 = scmp.lt.s32.totalorder %s28_s24, %s28_s24 }
  0x1b   :  { %p755_p11 = scmp.ne.s32.totalorder %s28_s24, %s754_s4  ;;  %p760_p13 = scmp.lt.s32.totalorder %s754_s4, %s754_s4 }
  0x1d   :  { %p761_p0 = por %p760_p13, %p759_p12 }
  0x1f   :  { %p762_p1 = pnand %p761_p0, %p755_p11 }
  0x21   :  { %765 = shalt.err (!%p762_p1)
}
  0x22   :  { %s798_s0 = smov 256   ;;  %s799_s5 = smov 16  }
  0x23   :  { %33 = dma.hbm_to_vmem [thread:$0]  %s855_s1, 8192, %s28_s24, [#allocation6], %s798_s0, %s798_s0, %s799_s5  }
  0x24   :  { %788 = dma.done.wait [#allocation3], 256  }
  0x25   :  { %789 = vsyncadd [#allocation3], 4294967040 }
  0x26   :  { %790 = dma.done.wait [#allocation6], 8192  }
  0x27   :  { %791 = vsyncadd [#allocation6], 4294959104  ;;  %v623_v0 = vld [vmem:[#allocation5 + $0x4] ss:$16 sps:$4 sm:$0xff]   ;;  %v625_v1 = vld [vmem:[#allocation5 + $0xc] ss:$16 sps:$4 sm:$0xff]  }
  0x28   :  { %436 = vmatprep.subr.bf16.mxu0 %v623_v0  ;;  %v627_v2 = vld [vmem:[#allocation5] ss:$16 sps:$4 sm:$0xff]   ;;  %v628_v3 = vld [vmem:[#allocation5 + $0x8] ss:$16 sps:$4 sm:$0xff]   ;;  %479 = vmatprep.subr.bf16.mxu1 %v625_v1  ;;  %v629_v4 = vld [vmem:[#allocation5 + $0x24] ss:$16 sps:$4 sm:$0xff]  }
  0x29   :  { %437 = vmatpush1.bf16.msra.mxu0 %v627_v2  ;;  %480 = vmatpush1.bf16.msra.mxu1 %v628_v3  ;;  %v631_v5 = vld [vmem:[#allocation5 + $0x2c] ss:$16 sps:$4 sm:$0xff]   ;;  %v633_v6 = vld [vmem:[#allocation5 + $0x20] ss:$16 sps:$4 sm:$0xff]   ;;  %v634_v7 = vld [vmem:[#allocation5 + $0x28] ss:$16 sps:$4 sm:$0xff]  }
  0x2a   :  { %438 = vmatprep.subr.bf16.mxu0 %v629_v4  ;;  %481 = vmatprep.subr.bf16.mxu1 %v631_v5  ;;  %v635_v8 = vld [vmem:[#allocation5 + $0x44] ss:$16 sps:$4 sm:$0xff]   ;;  %v637_v9 = vld [vmem:[#allocation5 + $0x4c] ss:$16 sps:$4 sm:$0xff]   ;;  %v639_v10 = vld [vmem:[#allocation5 + $0x40] ss:$16 sps:$4 sm:$0xff]  }
  0x2b   :  { %v640_v11 = vld [vmem:[#allocation5 + $0x48] ss:$16 sps:$4 sm:$0xff]   ;;  %v641_v12 = vld [vmem:[#allocation5 + $0x64] ss:$16 sps:$4 sm:$0xff]   ;;  %v643_v13 = vld [vmem:[#allocation5 + $0x6c] ss:$16 sps:$4 sm:$0xff]  }
  0x2c   :  { %v645_v14 = vld [vmem:[#allocation5 + $0x60] ss:$16 sps:$4 sm:$0xff]   ;;  %v646_v15 = vld [vmem:[#allocation5 + $0x68] ss:$16 sps:$4 sm:$0xff]   ;;  %v647_v16 = vld [vmem:[#allocation5 + $0x84] ss:$16 sps:$4 sm:$0xff]  }
  0x2d   :  { %439 = vmatpush1.bf16.msra.mxu0 %v633_v6  ;;  %482 = vmatpush1.bf16.msra.mxu1 %v634_v7  ;;  %v649_v17 = vld [vmem:[#allocation5 + $0x8c] ss:$16 sps:$4 sm:$0xff]   ;;  %v651_v18 = vld [vmem:[#allocation5 + $0x80] ss:$16 sps:$4 sm:$0xff]   ;;  %v652_v19 = vld [vmem:[#allocation5 + $0x88] ss:$16 sps:$4 sm:$0xff]  }
  0x2e   :  { %440 = vmatprep.subr.bf16.mxu0 %v635_v8  ;;  %483 = vmatprep.subr.bf16.mxu1 %v637_v9  ;;  %v653_v20 = vld [vmem:[#allocation5 + $0xa4] ss:$16 sps:$4 sm:$0xff]   ;;  %v655_v21 = vld [vmem:[#allocation5 + $0xac] ss:$16 sps:$4 sm:$0xff]   ;;  %v657_v22 = vld [vmem:[#allocation5 + $0xa0] ss:$16 sps:$4 sm:$0xff]  }
  0x2f   :  { %v658_v23 = vld [vmem:[#allocation5 + $0xa8] ss:$16 sps:$4 sm:$0xff]   ;;  %v659_v24 = vld [vmem:[#allocation5 + $0xc4] ss:$16 sps:$4 sm:$0xff]   ;;  %v661_v25 = vld [vmem:[#allocation5 + $0xcc] ss:$16 sps:$4 sm:$0xff]  }
  0x30   :  { %v663_v26 = vld [vmem:[#allocation5 + $0xc0] ss:$16 sps:$4 sm:$0xff]   ;;  %v664_v27 = vld [vmem:[#allocation5 + $0xc8] ss:$16 sps:$4 sm:$0xff]   ;;  %v665_v28 = vld [vmem:[#allocation5 + $0xe4] ss:$16 sps:$4 sm:$0xff]  }
  0x31   :  { %441 = vmatpush1.bf16.msra.mxu0 %v639_v10  ;;  %484 = vmatpush1.bf16.msra.mxu1 %v640_v11  ;;  %v667_v29 = vld [vmem:[#allocation5 + $0xec] ss:$16 sps:$4 sm:$0xff]   ;;  %v669_v30 = vld [vmem:[#allocation5 + $0xe0] ss:$16 sps:$4 sm:$0xff]   ;;  %v670_v31 = vld [vmem:[#allocation5 + $0xe8] ss:$16 sps:$4 sm:$0xff]  }
  0x32   :  { %442 = vmatprep.subr.bf16.mxu0 %v641_v12  ;;  %485 = vmatprep.subr.bf16.mxu1 %v643_v13  ;;  %v671_v32 = vld [vmem:[#allocation5 + $0x104] ss:$16 sps:$4 sm:$0xff]   ;;  %v673_v33 = vld [vmem:[#allocation5 + $0x10c] ss:$16 sps:$4 sm:$0xff]   ;;  %v675_v34 = vld [vmem:[#allocation5 + $0x100] ss:$16 sps:$4 sm:$0xff]  }
  0x33   :  { %v676_v35 = vld [vmem:[#allocation5 + $0x108] ss:$16 sps:$4 sm:$0xff]   ;;  %v677_v36 = vld [vmem:[#allocation5 + $0x124] ss:$16 sps:$4 sm:$0xff]   ;;  %v679_v37 = vld [vmem:[#allocation5 + $0x12c] ss:$16 sps:$4 sm:$0xff]  }
  0x34   :  { %v681_v38 = vld [vmem:[#allocation5 + $0x120] ss:$16 sps:$4 sm:$0xff]   ;;  %v682_v39 = vld [vmem:[#allocation5 + $0x128] ss:$16 sps:$4 sm:$0xff]   ;;  %v683_v40 = vld [vmem:[#allocation5 + $0x144] ss:$16 sps:$4 sm:$0xff]  }
  0x35   :  { %443 = vmatpush1.bf16.msra.mxu0 %v645_v14  ;;  %486 = vmatpush1.bf16.msra.mxu1 %v646_v15  ;;  %v685_v41 = vld [vmem:[#allocation5 + $0x14c] ss:$16 sps:$4 sm:$0xff]   ;;  %v687_v42 = vld [vmem:[#allocation5 + $0x140] ss:$16 sps:$4 sm:$0xff]   ;;  %v688_v43 = vld [vmem:[#allocation5 + $0x148] ss:$16 sps:$4 sm:$0xff]  }
  0x36   :  { %444 = vmatprep.subr.bf16.mxu0 %v647_v16  ;;  %487 = vmatprep.subr.bf16.mxu1 %v649_v17  ;;  %v689_v44 = vld [vmem:[#allocation5 + $0x164] ss:$16 sps:$4 sm:$0xff]   ;;  %v691_v45 = vld [vmem:[#allocation5 + $0x16c] ss:$16 sps:$4 sm:$0xff]   ;;  %v693_v47 = vld [vmem:[#allocation5 + $0x160] ss:$16 sps:$4 sm:$0xff]  }
  0x37   :  { %v721_v46 = vld [vmem:[#allocation2 + $0x4] ss:$8 sps:$4 sm:$0xff]   ;;  %v694_v48 = vld [vmem:[#allocation5 + $0x168] ss:$16 sps:$4 sm:$0xff]   ;;  %v699_v51 = vld [vmem:[#allocation5 + $0x180] ss:$16 sps:$4 sm:$0xff]  }
  0x38   :  { %v695_v49 = vld [vmem:[#allocation5 + $0x184] ss:$16 sps:$4 sm:$0xff]   ;;  %v697_v50 = vld [vmem:[#allocation5 + $0x18c] ss:$16 sps:$4 sm:$0xff]   ;;  %468 = vmatprep.mubr.bf16.mxu0 %v721_v46  ;;  %511 = vmatprep.mubr.bf16.mxu1 %v721_v46  ;;  %v700_v52 = vld [vmem:[#allocation5 + $0x188] ss:$16 sps:$4 sm:$0xff]  }
  0x39   :  { %445 = vmatpush1.bf16.msra.mxu0 %v651_v18  ;;  %488 = vmatpush1.bf16.msra.mxu1 %v652_v19  ;;  %v701_v53 = vld [vmem:[#allocation5 + $0x1a4] ss:$16 sps:$4 sm:$0xff]   ;;  %v703_v54 = vld [vmem:[#allocation5 + $0x1ac] ss:$16 sps:$4 sm:$0xff]   ;;  %v705_v55 = vld [vmem:[#allocation5 + $0x1a0] ss:$16 sps:$4 sm:$0xff]  }
  0x3a   :  { %446 = vmatprep.subr.bf16.mxu0 %v653_v20  ;;  %489 = vmatprep.subr.bf16.mxu1 %v655_v21  ;;  %v706_v56 = vld [vmem:[#allocation5 + $0x1a8] ss:$16 sps:$4 sm:$0xff]   ;;  %v707_v57 = vld [vmem:[#allocation5 + $0x1c4] ss:$16 sps:$4 sm:$0xff]   ;;  %v709_v58 = vld [vmem:[#allocation5 + $0x1cc] ss:$16 sps:$4 sm:$0xff]  }
  0x3b   :  { %v711_v59 = vld [vmem:[#allocation5 + $0x1c0] ss:$16 sps:$4 sm:$0xff]   ;;  %v712_v60 = vld [vmem:[#allocation5 + $0x1c8] ss:$16 sps:$4 sm:$0xff]   ;;  %v713_v61 = vld [vmem:[#allocation5 + $0x1e4] ss:$16 sps:$4 sm:$0xff]  }
  0x3c   :  { %v715_v62 = vld [vmem:[#allocation5 + $0x1ec] ss:$16 sps:$4 sm:$0xff]   ;;  %v717_v63 = vld [vmem:[#allocation5 + $0x1e0] ss:$16 sps:$4 sm:$0xff]   ;;  %v718_v0 = vld [vmem:[#allocation5 + $0x1e8] ss:$16 sps:$4 sm:$0xff]  }
  0x3d   :  { %447 = vmatpush1.bf16.msra.mxu0 %v657_v22  ;;  %490 = vmatpush1.bf16.msra.mxu1 %v658_v23  ;;  %v719_v1 = vld [vmem:[#allocation2] ss:$8 sps:$4 sm:$0xff]   ;;  %s800_s1 = smov [#allocation7]  }
  0x3e   :  { %448 = vmatprep.subr.bf16.mxu0 %v659_v24  ;;  %491 = vmatprep.subr.bf16.mxu1 %v661_v25  ;;  %s535_s8 = sshll.u32 %s800_s1, 4  ;;  %s536_s8 = int_to_ptr.vmem [resolvable:$true] %s535_s8 }
  0x3f   :  { %s766_s9 = scalar_lea.vmem %s536_s8, 1024  ;;  %p771_p3 = scmp.lt.s32.totalorder %s536_s8, %s536_s8 }
  0x40   :  { %p767_p2 = scmp.ne.s32.totalorder %s536_s8, %s766_s9  ;;  %p772_p4 = scmp.lt.s32.totalorder %s766_s9, %s766_s9 }
  0x41   :  { %449 = vmatpush1.bf16.msra.mxu0 %v663_v26  ;;  %492 = vmatpush1.bf16.msra.mxu1 %v664_v27 }
  0x42   :  { %450 = vmatprep.subr.bf16.mxu0 %v665_v28  ;;  %493 = vmatprep.subr.bf16.mxu1 %v667_v29  ;;  %p773_p5 = por %p772_p4, %p771_p3 }
  0x44   :  { %p774_p6 = pnand %p773_p5, %p767_p2 }
  0x45   :  { %451 = vmatpush1.bf16.msra.mxu0 %v669_v30  ;;  %494 = vmatpush1.bf16.msra.mxu1 %v670_v31 }
  0x46   :  { %452 = vmatprep.subr.bf16.mxu0 %v671_v32  ;;  %495 = vmatprep.subr.bf16.mxu1 %v673_v33 }
  0x49   :  { %453 = vmatpush1.bf16.msra.mxu0 %v675_v34  ;;  %496 = vmatpush1.bf16.msra.mxu1 %v676_v35 }
  0x4a   :  { %454 = vmatprep.subr.bf16.mxu0 %v677_v36  ;;  %497 = vmatprep.subr.bf16.mxu1 %v679_v37 }
  0x4d   :  { %455 = vmatpush1.bf16.msra.mxu0 %v681_v38  ;;  %498 = vmatpush1.bf16.msra.mxu1 %v682_v39 }
  0x4e   :  { %456 = vmatprep.subr.bf16.mxu0 %v683_v40  ;;  %499 = vmatprep.subr.bf16.mxu1 %v685_v41 }
  0x51   :  { %457 = vmatpush1.bf16.msra.mxu0 %v687_v42  ;;  %500 = vmatpush1.bf16.msra.mxu1 %v688_v43 }
  0x52   :  { %458 = vmatprep.subr.bf16.mxu0 %v689_v44  ;;  %501 = vmatprep.subr.bf16.mxu1 %v691_v45 }
  0x55   :  { %459 = vmatpush1.bf16.msra.mxu0 %v693_v47  ;;  %502 = vmatpush1.bf16.msra.mxu1 %v694_v48 }
  0x56   :  { %460 = vmatprep.subr.bf16.mxu0 %v695_v49  ;;  %503 = vmatprep.subr.bf16.mxu1 %v697_v50 }
  0x59   :  { %461 = vmatpush1.bf16.msra.mxu0 %v699_v51  ;;  %504 = vmatpush1.bf16.msra.mxu1 %v700_v52 }
  0x5a   :  { %462 = vmatprep.subr.bf16.mxu0 %v701_v53  ;;  %505 = vmatprep.subr.bf16.mxu1 %v703_v54 }
  0x5d   :  { %463 = vmatpush1.bf16.msra.mxu0 %v705_v55  ;;  %506 = vmatpush1.bf16.msra.mxu1 %v706_v56 }
  0x5e   :  { %464 = vmatprep.subr.bf16.mxu0 %v707_v57  ;;  %507 = vmatprep.subr.bf16.mxu1 %v709_v58 }
  0x61   :  { %465 = vmatpush1.bf16.msra.mxu0 %v711_v59  ;;  %508 = vmatpush1.bf16.msra.mxu1 %v712_v60 }
  0x62   :  { %466 = vmatprep.subr.bf16.mxu0 %v713_v61  ;;  %509 = vmatprep.subr.bf16.mxu1 %v715_v62 }
  0x65   :  { %467 = vmatpush1.bf16.msra.mxu0 %v717_v63  ;;  %510 = vmatpush1.bf16.msra.mxu1 %v718_v0 }
  0x68   :  { %469 = vmatmul.mubr.bf16.vlgmr.msra.gmra.mrb[0].mxu0 %v719_v1  ;;  %512 = vmatmul.mubr.bf16.vlgmr.msra.gmra.mrb[0].mxu1 %v719_v1 }
 0x13b   :  { %v470_v2 = vpop.f32.mrb[0].mxu0  ;;  %v513_v3 = vpop.f32.mrb[0].mxu1 }
 0x13c   :  { %522 = vst [vmem:[#allocation7] sm:$0xff] %v470_v2  ;;  %524 = vst [vmem:[#allocation7 + $0x10] sm:$0xff] %v513_v3  ;;  %v472_v4 = vpop.f32.mrb[1].mxu0  ;;  %v515_v5 = vpop.f32.mrb[1].mxu1 }
 0x13d   :  { %523 = vst [vmem:[#allocation7 + $0x8] sm:$0xff] %v472_v4  ;;  %525 = vst [vmem:[#allocation7 + $0x18] sm:$0xff] %v515_v5  ;;  %v474_v6 = vpop.f32.mrb[2].mxu0  ;;  %v517_v7 = vpop.f32.mrb[2].mxu1 }
 0x13e   :  { %526 = vst [vmem:[#allocation7 + $0x20] sm:$0xff] %v474_v6  ;;  %528 = vst [vmem:[#allocation7 + $0x30] sm:$0xff] %v517_v7  ;;  %v476_v8 = vpop.f32.mrb[3].mxu0  ;;  %v519_v9 = vpop.f32.mrb[3].mxu1 }
 0x13f   :  { %527 = vst [vmem:[#allocation7 + $0x28] sm:$0xff] %v476_v8  ;;  %529 = vst [vmem:[#allocation7 + $0x38] sm:$0xff] %v519_v9 }
 0x140   :  { %777 = shalt.err (!%p774_p6)
}
 0x141   :  { %s778_s12 = scalar_lea.hbm %s856_s2, 1024 }
 0x142   :  { %p779_p7 = scmp.ne.s32.totalorder %s856_s2, %s778_s12  ;;  %p782_p8 = scmp.lt.u32.totalorder %s778_s12, %s856_s2 }
 0x144   :  { %p784_p9 = pnand %p782_p8, %p779_p7 }
 0x146   :  { %787 = shalt.err (!%p784_p9)
}
 0x147   :  { %s801_s17 = smov 512   ;;  %s802_s18 = smov 32  }
 0x148   :  { %541 = dma.vmem_to_hbm [thread:$0]  %s536_s8, 1024, %s856_s2, [#allocation4], %s801_s17, %s801_s17, %s802_s18  }
 0x149   :  { %792 = dma.done.wait [#allocation4], 1024  }
 0x14a   :  { %793 = vsyncadd [#allocation4], 4294966272 }
 0x14b   :  { %545 = vsyncpa [#allocation3], 1 }
 0x14c   :  { %546 = vsyncpa [#allocation6], 1 }
 0x14d   :  { %547 = vsyncpa [#allocation4], 1 }

</bundles_post_ra>
